<compile_context>
chip_gen: v6e
topology: v6e:2x2x1
jax: 0.10.0
libtpu: 0.0.40
codegen_flags: <defaults>
</compile_context>

<pallas_src>
import jax
import jax.numpy as jnp
from jax.experimental import pallas as pl
from jax.experimental.pallas import tpu as pltpu

IN_DIM = 512
H1_DIM = 256
H2_DIM = 128
OUT_DIM = 10          # output_dim of the module (synthetic choice for the demo)


def _round_up(x: int, m: int) -> int:
    return ((x + m - 1) // m) * m


def mlp_block_kernel(x_ref, w1_ref, b1_ref, w2_ref, b2_ref, w3_ref, b3_ref, o_ref):
    # x_ref : (BM, 512) f32  (cast to bf16 in-kernel; saves a wrapper HBM pass)
    # w1_ref: (512, 256) bf16   b1_ref: (1, 256) f32
    # w2_ref: (256, 128) bf16   b2_ref: (1, 128) f32
    # w3_ref: (128, OUT_PAD) bf16   b3_ref: (1, OUT_PAD) f32
    # o_ref : (BM, OUT_PAD) f32
    x = x_ref[...].astype(jnp.bfloat16)

    # layer1 + ReLU
    h1 = jnp.dot(x, w1_ref[...], preferred_element_type=jnp.float32)
    h1 = jnp.maximum(h1 + b1_ref[...], 0.0)

    # layer2 + ReLU  (bf16 operands, f32 accumulator)
    h2 = jnp.dot(h1.astype(jnp.bfloat16), w2_ref[...],
                 preferred_element_type=jnp.float32)
    h2 = jnp.maximum(h2 + b2_ref[...], 0.0)

    # layer3 (no activation)
    out = jnp.dot(h2.astype(jnp.bfloat16), w3_ref[...],
                  preferred_element_type=jnp.float32)
    o_ref[...] = (out + b3_ref[...]).astype(o_ref.dtype)


def prepare_params(w1, b1, w2, b2, w3, b3):
    """One-time layout prep, hoisted out of the per-call hot path.

    PyTorch nn.Linear layout in: w [out, in], b [out].
    Returns ((w1_t, b1, w2_t, b2, w3_t, b3), out_dim, out_pad) with weights
    transposed to [in, out], cast to bf16, and layer 3 lane-padded to a
    multiple of 128 columns (zero-padded, so padded outputs are exactly zero).
    """
    out_dim = int(w3.shape[0])
    out_pad = _round_up(out_dim, 128)

    w1_t = w1.T.astype(jnp.bfloat16)                       # (512, 256)
    w2_t = w2.T.astype(jnp.bfloat16)                       # (256, 128)
    w3_t = jnp.zeros((H2_DIM, out_pad), dtype=jnp.bfloat16).at[:, :out_dim].set(
        w3.T.astype(jnp.bfloat16))                         # (128, out_pad)

    b1_2d = b1.reshape(1, H1_DIM).astype(jnp.float32)
    b2_2d = b2.reshape(1, H2_DIM).astype(jnp.float32)
    b3_2d = jnp.zeros((1, out_pad), dtype=jnp.float32).at[:, :out_dim].set(
        b3.astype(jnp.float32))

    return (w1_t, b1_2d, w2_t, b2_2d, w3_t, b3_2d), out_dim, out_pad


def _choose_bm(B: int, block_m: int) -> int:
    """Batch tile: >=16 rows (bf16 sublane packing); multiples of 256 and
    >=2 tiles (v7x dual-TC) for large batches; capped at block_m."""
    if B <= 256:
        return max(16, _round_up(B, 16))
    bm = min(_round_up(block_m, 256), _round_up(B, 256))
    # Prefer at least two tiles so the "parallel" axis can shard across TCs.
    if _round_up(B, bm) // bm < 2 and bm >= 512:
        bm = _round_up(bm // 2, 256)
    return bm


def mlp_block_forward(x, prepared, out_dim, out_pad, *, block_m: int = 1024):
    """Pallas forward pass of MLP_block.

    x        : [B, 512] f32 (fed to the kernel as-is; cast to bf16 in-kernel)
    prepared : tuple from prepare_params()
    Returns [B, out_dim] f32.
    """
    B = x.shape[0]
    w1_t, b1_2d, w2_t, b2_2d, w3_t, b3_2d = prepared

    bm = _choose_bm(B, block_m)
    b_pad = _round_up(B, bm)
    n_tiles = b_pad // bm

    # Only pad the batch when B is not a multiple of the tile.
    x_in = x if b_pad == B else jnp.pad(x, ((0, b_pad - B), (0, 0)))

    # Cost hint for XLA scheduling around the custom call.
    flops = 2 * b_pad * (IN_DIM * H1_DIM + H1_DIM * H2_DIM + H2_DIM * out_pad)
    bytes_accessed = (
        x_in.size * x_in.dtype.itemsize
        + (w1_t.size + w2_t.size + w3_t.size) * 2
        + (b1_2d.size + b2_2d.size + b3_2d.size) * 4
        + b_pad * out_pad * 4
    )
    cost = pl.CostEstimate(flops=flops, transcendentals=0,
                           bytes_accessed=bytes_accessed)

    out_padded = pl.pallas_call(
        mlp_block_kernel,
        out_shape=jax.ShapeDtypeStruct((b_pad, out_pad), jnp.float32),
        grid_spec=pltpu.PrefetchScalarGridSpec(
            num_scalar_prefetch=0,
            grid=(n_tiles,),
            in_specs=[
                # x tile follows the batch grid axis (auto-pipelined)
                pl.BlockSpec((bm, IN_DIM), lambda i: (i, 0)),
                # weights / biases: constant block index -> stay VMEM-resident
                pl.BlockSpec((IN_DIM, H1_DIM), lambda i: (0, 0)),
                pl.BlockSpec((1, H1_DIM), lambda i: (0, 0)),
                pl.BlockSpec((H1_DIM, H2_DIM), lambda i: (0, 0)),
                pl.BlockSpec((1, H2_DIM), lambda i: (0, 0)),
                pl.BlockSpec((H2_DIM, out_pad), lambda i: (0, 0)),
                pl.BlockSpec((1, out_pad), lambda i: (0, 0)),
            ],
            out_specs=pl.BlockSpec((bm, out_pad), lambda i: (i, 0)),
        ),
        compiler_params=pltpu.CompilerParams(
            dimension_semantics=("parallel",),   # batch tiles are independent
        ),
        cost_estimate=cost,
    )(x_in, w1_t, b1_2d, w2_t, b2_2d, w3_t, b3_2d)

    # Skip the post-kernel slice pass entirely when nothing was padded.
    if b_pad == B and out_pad == out_dim:
        return out_padded
    return out_padded[:B, :out_dim]


def reference_f32(x, w1, b1, w2, b2, w3, b3):
    h1 = jnp.maximum(x @ w1.T + b1, 0.0)
    h2 = jnp.maximum(h1 @ w2.T + b2, 0.0)
    return h2 @ w3.T + b3


if __name__ == "__main__":
    key = jax.random.PRNGKey(0)
    kx, k1, kb1, k2, kb2, k3, kb3 = jax.random.split(key, 7)

    B = 8  # small demo batch (for real serving, batch requests to >=256 rows)
    x = jax.random.normal(kx, (B, IN_DIM), dtype=jnp.float32)

    # Deterministic params in PyTorch nn.Linear layout [out, in], Kaiming-ish scale.
    def _lin(kw, kb, fan_in, fan_out):
        s = 1.0 / (fan_in ** 0.5)
        w = jax.random.uniform(kw, (fan_out, fan_in), dtype=jnp.float32,
                               minval=-1.0, maxval=1.0) * s
        b = jax.random.uniform(kb, (fan_out,), dtype=jnp.float32,
                               minval=-1.0, maxval=1.0) * s
        return w, b

    w1, b1 = _lin(k1, kb1, IN_DIM, H1_DIM)
    w2, b2 = _lin(k2, kb2, H1_DIM, H2_DIM)
    w3, b3 = _lin(k3, kb3, H2_DIM, OUT_DIM)

    # One-time weight layout prep (out of the per-call hot path).
    prepared, out_dim, out_pad = prepare_params(w1, b1, w2, b2, w3, b3)
    prepared = jax.block_until_ready(prepared)

    out = mlp_block_forward(x, prepared, out_dim, out_pad)
    out = jax.block_until_ready(out)

    ref = reference_f32(x, w1, b1, w2, b2, w3, b3)
    assert out.shape == (B, OUT_DIM), f"bad shape {out.shape}"
    # bf16 matmul operands with f32 accumulation -> loosened tolerance vs f32 ref.
    assert jnp.allclose(out, ref, atol=3e-2, rtol=3e-2), "mismatch vs reference"

    print("KERNEL_OK")
</pallas_src>

<mosaic_0001>
module attributes {stable_mosaic.version = 11 : i64} {
  func.func @mlp_block_kernel(%arg0: i32, %arg1: memref<16x512xf32, #tpu.memory_space<vmem>>, %arg2: memref<512x256xbf16, #tpu.memory_space<vmem>>, %arg3: memref<1x256xf32, #tpu.memory_space<vmem>>, %arg4: memref<256x128xbf16, #tpu.memory_space<vmem>>, %arg5: memref<1x128xf32, #tpu.memory_space<vmem>>, %arg6: memref<128x128xbf16, #tpu.memory_space<vmem>>, %arg7: memref<1x128xf32, #tpu.memory_space<vmem>>, %arg8: memref<16x128xf32, #tpu.memory_space<vmem>>) attributes {dimension_semantics = [#tpu.dimension_semantics<parallel>], iteration_bounds = array<i64: 1>, scalar_prefetch = 0 : i64, scratch_operands = 0 : i64, tpu.core_type = #tpu.core_type<tc>, window_params = [{transform_indices = @transform_0, window_bounds = array<i64: 16, 512>}, {pipeline_mode = #tpu.pipeline_mode<synchronous>, transform_indices = @transform_1, window_bounds = array<i64: 512, 256>}, {pipeline_mode = #tpu.pipeline_mode<synchronous>, transform_indices = @transform_2, window_bounds = array<i64: 1, 256>}, {pipeline_mode = #tpu.pipeline_mode<synchronous>, transform_indices = @transform_3, window_bounds = array<i64: 256, 128>}, {pipeline_mode = #tpu.pipeline_mode<synchronous>, transform_indices = @transform_4, window_bounds = array<i64: 1, 128>}, {pipeline_mode = #tpu.pipeline_mode<synchronous>, transform_indices = @transform_5, window_bounds = array<i64: 128, 128>}, {pipeline_mode = #tpu.pipeline_mode<synchronous>, transform_indices = @transform_6, window_bounds = array<i64: 1, 128>}, {transform_indices = @transform_7, window_bounds = array<i64: 16, 128>}]} {
    %c0 = arith.constant 0 : index
    %c0_0 = arith.constant 0 : index
    %0 = vector.load %arg1[%c0, %c0_0] : memref<16x512xf32, #tpu.memory_space<vmem>>, vector<16x512xf32>
    %1 = arith.truncf %0 : vector<16x512xf32> to vector<16x512xbf16>
    %c0_1 = arith.constant 0 : index
    %c0_2 = arith.constant 0 : index
    %2 = vector.load %arg2[%c0_1, %c0_2] : memref<512x256xbf16, #tpu.memory_space<vmem>>, vector<512x256xbf16>
    %cst = arith.constant dense<0.000000e+00> : vector<16x256xf32>
    %3 = tpu.matmul %1, %2, %cst {dimension_numbers = #tpu.dot_dimension_numbers<[1], [0], [0], [1], [0, 0, 1, 1], [], []>} : vector<16x512xbf16>, vector<512x256xbf16>, vector<16x256xf32> -> vector<16x256xf32>
    %c0_3 = arith.constant 0 : index
    %c0_4 = arith.constant 0 : index
    %4 = vector.load %arg3[%c0_3, %c0_4] : memref<1x256xf32, #tpu.memory_space<vmem>>, vector<1x256xf32>
    %5 = vector.broadcast %4 : vector<1x256xf32> to vector<16x256xf32>
    %6 = arith.addf %3, %5 : vector<16x256xf32>
    %cst_5 = arith.constant 0.000000e+00 : f32
    %7 = vector.broadcast %cst_5 : f32 to vector<16x256xf32>
    %8 = arith.maximumf %6, %7 : vector<16x256xf32>
    %9 = arith.truncf %8 : vector<16x256xf32> to vector<16x256xbf16>
    %c0_6 = arith.constant 0 : index
    %c0_7 = arith.constant 0 : index
    %10 = vector.load %arg4[%c0_6, %c0_7] : memref<256x128xbf16, #tpu.memory_space<vmem>>, vector<256x128xbf16>
    %cst_8 = arith.constant dense<0.000000e+00> : vector<16x128xf32>
    %11 = tpu.matmul %9, %10, %cst_8 {dimension_numbers = #tpu.dot_dimension_numbers<[1], [0], [0], [1], [0, 0, 1, 1], [], []>} : vector<16x256xbf16>, vector<256x128xbf16>, vector<16x128xf32> -> vector<16x128xf32>
    %c0_9 = arith.constant 0 : index
    %c0_10 = arith.constant 0 : index
    %12 = vector.load %arg5[%c0_9, %c0_10] : memref<1x128xf32, #tpu.memory_space<vmem>>, vector<1x128xf32>
    %13 = vector.broadcast %12 : vector<1x128xf32> to vector<16x128xf32>
    %14 = arith.addf %11, %13 : vector<16x128xf32>
    %cst_11 = arith.constant 0.000000e+00 : f32
    %15 = vector.broadcast %cst_11 : f32 to vector<16x128xf32>
    %16 = arith.maximumf %14, %15 : vector<16x128xf32>
    %17 = arith.truncf %16 : vector<16x128xf32> to vector<16x128xbf16>
    %c0_12 = arith.constant 0 : index
    %c0_13 = arith.constant 0 : index
    %18 = vector.load %arg6[%c0_12, %c0_13] : memref<128x128xbf16, #tpu.memory_space<vmem>>, vector<128x128xbf16>
    %cst_14 = arith.constant dense<0.000000e+00> : vector<16x128xf32>
    %19 = tpu.matmul %17, %18, %cst_14 {dimension_numbers = #tpu.dot_dimension_numbers<[1], [0], [0], [1], [0, 0, 1, 1], [], []>} : vector<16x128xbf16>, vector<128x128xbf16>, vector<16x128xf32> -> vector<16x128xf32>
    %c0_15 = arith.constant 0 : index
    %c0_16 = arith.constant 0 : index
    %20 = vector.load %arg7[%c0_15, %c0_16] : memref<1x128xf32, #tpu.memory_space<vmem>>, vector<1x128xf32>
    %21 = vector.broadcast %20 : vector<1x128xf32> to vector<16x128xf32>
    %22 = arith.addf %19, %21 : vector<16x128xf32>
    %c0_17 = arith.constant 0 : index
    %c0_18 = arith.constant 0 : index
    %23 = vector.load %arg8[%c0_17, %c0_18] : memref<16x128xf32, #tpu.memory_space<vmem>>, vector<16x128xf32>
    tpu.vector_store %arg8[%c0_17, %c0_18], %22 {strides = array<i32>} : memref<16x128xf32, #tpu.memory_space<vmem>>, vector<16x128xf32>,
    return
  }
  func.func @transform_0(%arg0: i32) -> (i32, i32) {
    %c0_i32 = arith.constant 0 : i32
    %c0_i32_0 = arith.constant 0 : i32
    return %arg0, %c0_i32 : i32, i32
  }
  func.func @transform_1(%arg0: i32) -> (i32, i32) {
    %c0_i32 = arith.constant 0 : i32
    %c0_i32_0 = arith.constant 0 : i32
    %c0_i32_1 = arith.constant 0 : i32
    return %c0_i32, %c0_i32_0 : i32, i32
  }
  func.func @transform_2(%arg0: i32) -> (i32, i32) {
    %c0_i32 = arith.constant 0 : i32
    %c0_i32_0 = arith.constant 0 : i32
    %c0_i32_1 = arith.constant 0 : i32
    return %c0_i32, %c0_i32_0 : i32, i32
  }
  func.func @transform_3(%arg0: i32) -> (i32, i32) {
    %c0_i32 = arith.constant 0 : i32
    %c0_i32_0 = arith.constant 0 : i32
    %c0_i32_1 = arith.constant 0 : i32
    return %c0_i32, %c0_i32_0 : i32, i32
  }
  func.func @transform_4(%arg0: i32) -> (i32, i32) {
    %c0_i32 = arith.constant 0 : i32
    %c0_i32_0 = arith.constant 0 : i32
    %c0_i32_1 = arith.constant 0 : i32
    return %c0_i32, %c0_i32_0 : i32, i32
  }
  func.func @transform_5(%arg0: i32) -> (i32, i32) {
    %c0_i32 = arith.constant 0 : i32
    %c0_i32_0 = arith.constant 0 : i32
    %c0_i32_1 = arith.constant 0 : i32
    return %c0_i32, %c0_i32_0 : i32, i32
  }
  func.func @transform_6(%arg0: i32) -> (i32, i32) {
    %c0_i32 = arith.constant 0 : i32
    %c0_i32_0 = arith.constant 0 : i32
    %c0_i32_1 = arith.constant 0 : i32
    return %c0_i32, %c0_i32_0 : i32, i32
  }
  func.func @transform_7(%arg0: i32) -> (i32, i32) {
    %c0_i32 = arith.constant 0 : i32
    %c0_i32_0 = arith.constant 0 : i32
    return %arg0, %c0_i32 : i32, i32
  }
}

</mosaic_0001>

<bundles_post_ra>
// kernel: tpu_custom_call.1
= control target key start
LH: loop header
LB: loop body
LE: loop exit
PB: predicated region body
PF: predicated region fallthrough
CT: control target
= control target key end

     0   :  { %12 = vsyncpa [#allocation3], 0  ;;  %s1360_s0 = inlined_call_operand.hbm [shape: f32[16,512], index: 0, kind: input, shape index: {}]   ;;  %s1361_s1 = inlined_call_operand.hbm [shape: bf16[512,256], index: 1, kind: input, shape index: {}]   ;;  %s1362_s2 = inlined_call_operand.vmem [shape: f32[1,256], index: 2, kind: input, shape index: {}]   ;;  %s1363_s3 = inlined_call_operand.hbm [shape: bf16[256,128], index: 3, kind: input, shape index: {}]   ;;  %s1364_s4 = inlined_call_operand.vmem [shape: f32[1,128], index: 4, kind: input, shape index: {}]   ;;  %s1365_s5 = inlined_call_operand.hbm [shape: bf16[128,128], index: 5, kind: input, shape index: {}]   ;;  %s1366_s6 = inlined_call_operand.vmem [shape: f32[1,128], index: 6, kind: input, shape index: {}]   ;;  %s1367_s7 = inlined_call_operand.hbm [shape: f32[16,128], index: 7, kind: output, shape index: {}]  }
   0x1   :  { %13 = vsyncpa [#allocation6], 0 }
   0x2   :  { %14 = vsyncpa [#allocation9], 0 }
   0x3   :  { %15 = vsyncpa [#allocation4], 0  ;;  %s1277_s24 = smov [#allocation5]  }
   0x4   :  { %s33_s25 = sshll.u32 %s1277_s24, 4  ;;  %s34_s25 = int_to_ptr.vmem [resolvable:$true] %s33_s25 }
   0x5   :  { %s1177_s26 = scalar_lea.vmem %s34_s25, 8192  ;;  %p1182_p1 = scmp.lt.s32.totalorder %s34_s25, %s34_s25 }
   0x6   :  { %p1178_p0 = scmp.ne.s32.totalorder %s34_s25, %s1177_s26  ;;  %p1183_p2 = scmp.lt.s32.totalorder %s1177_s26, %s1177_s26 }
   0x8   :  { %p1184_p3 = por %p1183_p2, %p1182_p1 }
   0xa   :  { %p1185_p4 = pnand %p1184_p3, %p1178_p0 }
   0xc   :  { %1188 = shalt.err (!%p1185_p4)
}
   0xd   :  { %s1278_s27 = smov 128   ;;  %s1279_s28 = smov 8  }
   0xe   :  { %39 = dma.hbm_to_vmem [thread:$0]  %s1361_s1, 8192, %s34_s25, [#allocation6], %s1278_s27, %s1278_s27, %s1279_s28  }
   0xf   :  { %s1280_s8 = smov [#allocation2]  }
  0x10   :  { %s21_s9 = sshll.u32 %s1280_s8, 4  ;;  %s22_s9 = int_to_ptr.vmem [resolvable:$true] %s21_s9 }
  0x11   :  { %s1197_s10 = scalar_lea.vmem %s22_s9, 1024  ;;  %p1202_p6 = scmp.lt.s32.totalorder %s22_s9, %s22_s9 }
  0x12   :  { %p1198_p5 = scmp.ne.s32.totalorder %s22_s9, %s1197_s10  ;;  %p1203_p7 = scmp.lt.s32.totalorder %s1197_s10, %s1197_s10 }
  0x14   :  { %p1204_p8 = por %p1203_p7, %p1202_p6 }
  0x16   :  { %p1205_p9 = pnand %p1204_p8, %p1198_p5 }
  0x18   :  { %1208 = shalt.err (!%p1205_p9)
}
  0x19   :  { %s1281_s11 = smov 512   ;;  %s1282_s12 = smov 32  }
  0x1a   :  { %27 = dma.hbm_to_vmem [thread:$0]  %s1360_s0, 1024, %s22_s9, [#allocation3], %s1281_s11, %s1281_s11, %s1282_s12  }
  0x1b   :  { %s1283_s15 = smov [#allocation7]  }
  0x1c   :  { %s47_s16 = sshll.u32 %s1283_s15, 4  ;;  %s48_s16 = int_to_ptr.vmem [resolvable:$true] %s47_s16 }
  0x1d   :  { %s1217_s1 = scalar_lea.vmem %s48_s16, 2048  ;;  %p1222_p11 = scmp.lt.s32.totalorder %s48_s16, %s48_s16 }
  0x1e   :  { %p1218_p10 = scmp.ne.s32.totalorder %s48_s16, %s1217_s1  ;;  %p1223_p12 = scmp.lt.s32.totalorder %s1217_s1, %s1217_s1 }
  0x20   :  { %p1224_p13 = por %p1223_p12, %p1222_p11 }
  0x22   :  { %p1225_p0 = pnand %p1224_p13, %p1218_p10 }
  0x24   :  { %1228 = shalt.err (!%p1225_p0)
}
  0x25   :  { %s1284_s17 = smov 64   ;;  %s1285_s18 = smov 4  }
  0x26   :  { %53 = dma.hbm_to_vmem [thread:$0]  %s1363_s3, 2048, %s48_s16, [#allocation6], %s1284_s17, %s1284_s17, %s1285_s18  }
  0x27   :  { %s1286_s21 = smov [#allocation8]  }
  0x28   :  { %s61_s22 = sshll.u32 %s1286_s21, 4  ;;  %s62_s22 = int_to_ptr.vmem [resolvable:$true] %s61_s22 }
  0x29   :  { %s1237_s0 = scalar_lea.vmem %s62_s22, 1024  ;;  %p1242_p2 = scmp.lt.s32.totalorder %s62_s22, %s62_s22 }
  0x2a   :  { %p1238_p1 = scmp.ne.s32.totalorder %s62_s22, %s1237_s0  ;;  %p1243_p3 = scmp.lt.s32.totalorder %s1237_s0, %s1237_s0 }
  0x2c   :  { %p1244_p4 = por %p1243_p3, %p1242_p2 }
  0x2e   :  { %p1245_p5 = pnand %p1244_p4, %p1238_p1 }
  0x30   :  { %1248 = shalt.err (!%p1245_p5)
}
  0x31   :  { %67 = dma.hbm_to_vmem [thread:$0]  %s1365_s5, 1024, %s62_s22, [#allocation9], %s1284_s17, %s1284_s17, %s1285_s18  }
  0x32   :  { %1269 = dma.done.wait [#allocation3], 1024  }
  0x33   :  { %1270 = vsyncadd [#allocation3], 4294966272 }
  0x34   :  { %1271 = dma.done.wait [#allocation6], 10240  }
  0x35   :  { %1272 = vsyncadd [#allocation6], 4294957056 }
  0x36   :  { %1273 = dma.done.wait [#allocation9], 1024  }
  0x37   :  { %1274 = vsyncadd [#allocation9], 4294966272  ;;  %v1049_v0 = vld [vmem:[#allocation5 + $0x74] ss:$8 sps:$4 sm:$0xff]   ;;  %v1053_v2 = vld [vmem:[#allocation5 + $0x70] ss:$8 sps:$4 sm:$0xff]  }
  0x38   :  { %v1051_v1 = vld [vmem:[#allocation5 + $0x174] ss:$8 sps:$4 sm:$0xff]   ;;  %491 = vmatprep.subr.bf16.mxu0 %v1049_v0  ;;  %v1054_v3 = vld [vmem:[#allocation5 + $0x170] ss:$8 sps:$4 sm:$0xff]   ;;  %v1055_v4 = vld [vmem:[#allocation5 + $0x64] ss:$8 sps:$4 sm:$0xff]  }
  0x39   :  { %534 = vmatprep.subr.bf16.mxu1 %v1051_v1  ;;  %492 = vmatpush1.bf16.msra.mxu0 %v1053_v2  ;;  %v1057_v5 = vld [vmem:[#allocation5 + $0x164] ss:$8 sps:$4 sm:$0xff]   ;;  %v1059_v6 = vld [vmem:[#allocation5 + $0x60] ss:$8 sps:$4 sm:$0xff]   ;;  %v1061_v8 = vld [vmem:[#allocation5 + $0x54] ss:$8 sps:$4 sm:$0xff]  }
  0x3a   :  { %535 = vmatpush1.bf16.msra.mxu1 %v1054_v3  ;;  %493 = vmatprep.subr.bf16.mxu0 %v1055_v4  ;;  %v1060_v7 = vld [vmem:[#allocation5 + $0x160] ss:$8 sps:$4 sm:$0xff]   ;;  %v1063_v9 = vld [vmem:[#allocation5 + $0x154] ss:$8 sps:$4 sm:$0xff]   ;;  %v1065_v10 = vld [vmem:[#allocation5 + $0x50] ss:$8 sps:$4 sm:$0xff]  }
  0x3b   :  { %536 = vmatprep.subr.bf16.mxu1 %v1057_v5  ;;  %v1066_v11 = vld [vmem:[#allocation5 + $0x150] ss:$8 sps:$4 sm:$0xff]   ;;  %v1067_v12 = vld [vmem:[#allocation5 + $0x44] ss:$8 sps:$4 sm:$0xff]   ;;  %v1071_v14 = vld [vmem:[#allocation5 + $0x40] ss:$8 sps:$4 sm:$0xff]  }
  0x3c   :  { %v1069_v13 = vld [vmem:[#allocation5 + $0x144] ss:$8 sps:$4 sm:$0xff]   ;;  %v1072_v15 = vld [vmem:[#allocation5 + $0x140] ss:$8 sps:$4 sm:$0xff]   ;;  %v1073_v16 = vld [vmem:[#allocation5 + $0x34] ss:$8 sps:$4 sm:$0xff]  }
  0x3d   :  { %494 = vmatpush1.bf16.msra.mxu0 %v1059_v6  ;;  %v1075_v17 = vld [vmem:[#allocation5 + $0x134] ss:$8 sps:$4 sm:$0xff]   ;;  %v1077_v18 = vld [vmem:[#allocation5 + $0x30] ss:$8 sps:$4 sm:$0xff]   ;;  %v1079_v20 = vld [vmem:[#allocation5 + $0x24] ss:$8 sps:$4 sm:$0xff]  }
  0x3e   :  { %537 = vmatpush1.bf16.msra.mxu1 %v1060_v7  ;;  %495 = vmatprep.subr.bf16.mxu0 %v1061_v8  ;;  %v1078_v19 = vld [vmem:[#allocation5 + $0x130] ss:$8 sps:$4 sm:$0xff]   ;;  %v1081_v21 = vld [vmem:[#allocation5 + $0x124] ss:$8 sps:$4 sm:$0xff]   ;;  %v1083_v22 = vld [vmem:[#allocation5 + $0x20] ss:$8 sps:$4 sm:$0xff]  }
  0x3f   :  { %538 = vmatprep.subr.bf16.mxu1 %v1063_v9  ;;  %v1084_v23 = vld [vmem:[#allocation5 + $0x120] ss:$8 sps:$4 sm:$0xff]   ;;  %v1085_v24 = vld [vmem:[#allocation5 + $0x14] ss:$8 sps:$4 sm:$0xff]   ;;  %v1089_v26 = vld [vmem:[#allocation5 + $0x10] ss:$8 sps:$4 sm:$0xff]  }
  0x40   :  { %v1087_v25 = vld [vmem:[#allocation5 + $0x114] ss:$8 sps:$4 sm:$0xff]   ;;  %v1090_v27 = vld [vmem:[#allocation5 + $0x110] ss:$8 sps:$4 sm:$0xff]   ;;  %v1091_v28 = vld [vmem:[#allocation5 + $0x4] ss:$8 sps:$4 sm:$0xff]  }
  0x41   :  { %496 = vmatpush1.bf16.msra.mxu0 %v1065_v10  ;;  %v1093_v29 = vld [vmem:[#allocation5 + $0x104] ss:$8 sps:$4 sm:$0xff]   ;;  %v1095_v30 = vld [vmem:[#allocation5] ss:$8 sps:$4 sm:$0xff]   ;;  %v1097_v32 = vld [vmem:[#allocation5 + $0xf4] ss:$8 sps:$4 sm:$0xff]  }
  0x42   :  { %539 = vmatpush1.bf16.msra.mxu1 %v1066_v11  ;;  %497 = vmatprep.subr.bf16.mxu0 %v1067_v12  ;;  %v1096_v31 = vld [vmem:[#allocation5 + $0x100] ss:$8 sps:$4 sm:$0xff]   ;;  %v1099_v33 = vld [vmem:[#allocation5 + $0x1f4] ss:$8 sps:$4 sm:$0xff]   ;;  %v1101_v34 = vld [vmem:[#allocation5 + $0xf0] ss:$8 sps:$4 sm:$0xff]  }
  0x43   :  { %540 = vmatprep.subr.bf16.mxu1 %v1069_v13  ;;  %v1102_v35 = vld [vmem:[#allocation5 + $0x1f0] ss:$8 sps:$4 sm:$0xff]   ;;  %v1103_v36 = vld [vmem:[#allocation5 + $0xe4] ss:$8 sps:$4 sm:$0xff]   ;;  %v1107_v38 = vld [vmem:[#allocation5 + $0xe0] ss:$8 sps:$4 sm:$0xff]  }
  0x44   :  { %v1105_v37 = vld [vmem:[#allocation5 + $0x1e4] ss:$8 sps:$4 sm:$0xff]   ;;  %v1108_v39 = vld [vmem:[#allocation5 + $0x1e0] ss:$8 sps:$4 sm:$0xff]   ;;  %v1109_v40 = vld [vmem:[#allocation5 + $0xd4] ss:$8 sps:$4 sm:$0xff]  }
  0x45   :  { %498 = vmatpush1.bf16.msra.mxu0 %v1071_v14  ;;  %v1111_v41 = vld [vmem:[#allocation5 + $0x1d4] ss:$8 sps:$4 sm:$0xff]   ;;  %v1113_v42 = vld [vmem:[#allocation5 + $0xd0] ss:$8 sps:$4 sm:$0xff]   ;;  %v1115_v44 = vld [vmem:[#allocation5 + $0xc4] ss:$8 sps:$4 sm:$0xff]  }
  0x46   :  { %541 = vmatpush1.bf16.msra.mxu1 %v1072_v15  ;;  %499 = vmatprep.subr.bf16.mxu0 %v1073_v16  ;;  %v1114_v43 = vld [vmem:[#allocation5 + $0x1d0] ss:$8 sps:$4 sm:$0xff]   ;;  %v1117_v45 = vld [vmem:[#allocation5 + $0x1c4] ss:$8 sps:$4 sm:$0xff]   ;;  %v1119_v50 = vld [vmem:[#allocation5 + $0xc0] ss:$8 sps:$4 sm:$0xff]  }
  0x47   :  { %542 = vmatprep.subr.bf16.mxu1 %v1075_v17  ;;  %v84_v46 = vld [vmem:[#allocation2 + $0x8] sm:$0xff]  ;;  %v86_v48 = vld [vmem:[#allocation2 + $0x18] sm:$0xff]  ;;  %v83_v6 = vld [vmem:[#allocation2] sm:$0xff]  ;;  %vm1288_vm0 = vmmov 0   ;;  %s1289_s30 = smov [#allocation10]  }
  0x48   :  { %v88_v47 = vld [vmem:[#allocation2 + $0x28] sm:$0xff]  ;;  %v90_v49 = vld [vmem:[#allocation2 + $0x38] sm:$0xff]  ;;  %v87_v7 = vld [vmem:[#allocation2 + $0x20] sm:$0xff]  ;;  %s881_s8 = sshll.u32 %s1289_s30, 4  ;;  %s882_s8 = int_to_ptr.vmem [resolvable:$true] %s881_s8 }
  0x49   :  { %500 = vmatpush1.bf16.msra.mxu0 %v1077_v18  ;;  %v1120_v51 = vld [vmem:[#allocation5 + $0x1c0] ss:$8 sps:$4 sm:$0xff]   ;;  %v1121_v52 = vld [vmem:[#allocation5 + $0xb4] ss:$8 sps:$4 sm:$0xff]   ;;  %v92_v53 = vpack.c.bf16 %v88_v47, %v84_v46  ;;  %v94_v54 = vpack.c.bf16 %v90_v49, %v86_v48  ;;  %v1125_v56 = vld [vmem:[#allocation5 + $0xb0] ss:$8 sps:$4 sm:$0xff]   ;;  %v91_v11 = vpack.c.bf16 %v87_v7, %v83_v6  ;;  %p1254_p7 = scmp.lt.s32.totalorder %s882_s8, %s882_s8 }
  0x4a   :  { %543 = vmatpush1.bf16.msra.mxu1 %v1078_v19  ;;  %501 = vmatprep.subr.bf16.mxu0 %v1079_v20  ;;  %v1123_v55 = vld [vmem:[#allocation5 + $0x1b4] ss:$8 sps:$4 sm:$0xff]   ;;  %v1126_v57 = vld [vmem:[#allocation5 + $0x1b0] ss:$8 sps:$4 sm:$0xff]   ;;  %v1127_v58 = vld [vmem:[#allocation5 + $0xa4] ss:$8 sps:$4 sm:$0xff]  }
  0x4b   :  { %544 = vmatprep.subr.bf16.mxu1 %v1081_v21  ;;  %523 = vmatprep.mubr.bf16.mxu0 %v92_v53  ;;  %v1129_v59 = vld [vmem:[#allocation5 + $0x1a4] ss:$8 sps:$4 sm:$0xff]   ;;  %v1131_v60 = vld [vmem:[#allocation5 + $0xa0] ss:$8 sps:$4 sm:$0xff]   ;;  %v1133_v62 = vld [vmem:[#allocation5 + $0x94] ss:$8 sps:$4 sm:$0xff]  }
  0x4c   :  { %566 = vmatprep.mubr.bf16.mxu1 %v94_v54  ;;  %v1132_v61 = vld [vmem:[#allocation5 + $0x1a0] ss:$8 sps:$4 sm:$0xff]   ;;  %v1135_v63 = vld [vmem:[#allocation5 + $0x194] ss:$8 sps:$4 sm:$0xff]   ;;  %v1137_v0 = vld [vmem:[#allocation5 + $0x90] ss:$8 sps:$4 sm:$0xff]  }
  0x4d   :  { %502 = vmatpush1.bf16.msra.mxu0 %v1083_v22  ;;  %v1138_v1 = vld [vmem:[#allocation5 + $0x190] ss:$8 sps:$4 sm:$0xff]   ;;  %v1139_v2 = vld [vmem:[#allocation5 + $0x84] ss:$8 sps:$4 sm:$0xff]   ;;  %v1143_v4 = vld [vmem:[#allocation5 + $0x80] ss:$8 sps:$4 sm:$0xff]  }
  0x4e   :  { %545 = vmatpush1.bf16.msra.mxu1 %v1084_v23  ;;  %503 = vmatprep.subr.bf16.mxu0 %v1085_v24  ;;  %v1141_v3 = vld [vmem:[#allocation5 + $0x184] ss:$8 sps:$4 sm:$0xff]   ;;  %v1144_v5 = vld [vmem:[#allocation5 + $0x180] ss:$8 sps:$4 sm:$0xff]   ;;  %v85_v8 = vld [vmem:[#allocation2 + $0x10] sm:$0xff] }
  0x4f   :  { %546 = vmatprep.subr.bf16.mxu1 %v1087_v25  ;;  %v89_v9 = vld [vmem:[#allocation2 + $0x30] sm:$0xff]  ;;  %v1145_v10 = vld [vmem:[#allocation7 + $0x78] sm:$0xff]   ;;  %v1149_v16 = vld [vmem:[#allocation7 + $0x68] sm:$0xff]  }
  0x50   :  { %v93_v12 = vpack.c.bf16 %v89_v9, %v85_v8  ;;  %v1146_v13 = vld [vmem:[#allocation7 + $0x38] sm:$0xff]   ;;  %v1147_v14 = vld [vmem:[#allocation7 + $0x70] sm:$0xff]   ;;  %v1150_v17 = vld [vmem:[#allocation7 + $0x28] sm:$0xff]  }
  0x51   :  { %504 = vmatpush1.bf16.msra.mxu0 %v1089_v26  ;;  %v1148_v15 = vld [vmem:[#allocation7 + $0x30] sm:$0xff]   ;;  %v1151_v18 = vld [vmem:[#allocation7 + $0x60] sm:$0xff]   ;;  %v1153_v20 = vld [vmem:[#allocation7 + $0x58] sm:$0xff]  }
  0x52   :  { %547 = vmatpush1.bf16.msra.mxu1 %v1090_v27  ;;  %505 = vmatprep.subr.bf16.mxu0 %v1091_v28  ;;  %v1152_v19 = vld [vmem:[#allocation7 + $0x20] sm:$0xff]   ;;  %v1154_v21 = vld [vmem:[#allocation7 + $0x18] sm:$0xff]   ;;  %v1155_v22 = vld [vmem:[#allocation7 + $0x50] sm:$0xff]  }
  0x53   :  { %548 = vmatprep.subr.bf16.mxu1 %v1093_v29  ;;  %v1156_v23 = vld [vmem:[#allocation7 + $0x10] sm:$0xff]   ;;  %v1157_v24 = vld [vmem:[#allocation7 + $0x48] sm:$0xff]   ;;  %v1159_v26 = vld [vmem:[#allocation7 + $0x40] sm:$0xff]   ;;  %v1287_v29 = vmov 0.0  }
  0x54   :  { %v1158_v25 = vld [vmem:[#allocation7 + $0x8] sm:$0xff]   ;;  %v1160_v27 = vld [vmem:[#allocation7] sm:$0xff]   ;;  %v1161_v28 = vld [vmem:[#allocation8 + $0x38] sm:$0xff]  }
  0x55   :  { %506 = vmatpush1.bf16.msra.mxu0 %v1095_v30  ;;  %v1162_v30 = vld [vmem:[#allocation8 + $0x30] sm:$0xff]  }
  0x56   :  { %549 = vmatpush1.bf16.msra.mxu1 %v1096_v31  ;;  %507 = vmatprep.subr.bf16.mxu0 %v1097_v32  ;;  %v1163_v31 = vld [vmem:[#allocation8 + $0x28] sm:$0xff]   ;;  %v1164_v32 = vld [vmem:[#allocation8 + $0x20] sm:$0xff]  }
  0x57   :  { %550 = vmatprep.subr.bf16.mxu1 %v1099_v33  ;;  %v161_v33 = vlaneseq }
  0x59   :  { %508 = vmatpush2.bf16.msra.mxu0 %v1101_v34  ;;  %v162_v34 = vshrl.u32 %v161_v33, 7 }
  0x5a   :  { %551 = vmatpush2.bf16.msra.mxu1 %v1102_v35  ;;  %509 = vmatprep.subr.bf16.mxu0 %v1103_v36 }
  0x5b   :  { %552 = vmatprep.subr.bf16.mxu1 %v1105_v37  ;;  %v167_v35 = vsub.s32 1, %v162_v34  ;;  %v163_v36 = vsub.s32 0, %v162_v34  ;;  %v159_v37 = vld [vmem:[%s1362_s2] sm:$0x3] }
  0x5d   :  { %510 = vmatpush2.bf16.msra.mxu0 %v1107_v38  ;;  %v168_v38 = vrot.slane %v159_v37, %v167_v35 }
  0x5e   :  { %553 = vmatpush2.bf16.msra.mxu1 %v1108_v39  ;;  %511 = vmatprep.subr.bf16.mxu0 %v1109_v40  ;;  %v164_v39 = vrot.slane %v159_v37, %v163_v36 }
  0x5f   :  { %554 = vmatprep.subr.bf16.mxu1 %v1111_v41 }
  0x61   :  { %512 = vmatpush2.bf16.msra.mxu0 %v1113_v42 }
  0x62   :  { %555 = vmatpush2.bf16.msra.mxu1 %v1114_v43  ;;  %513 = vmatprep.subr.bf16.mxu0 %v1115_v44 }
  0x63   :  { %556 = vmatprep.subr.bf16.mxu1 %v1117_v45 }
  0x65   :  { %514 = vmatpush2.bf16.msra.mxu0 %v1119_v50 }
  0x66   :  { %557 = vmatpush2.bf16.msra.mxu1 %v1120_v51  ;;  %515 = vmatprep.subr.bf16.mxu0 %v1121_v52 }
  0x67   :  { %558 = vmatprep.subr.bf16.mxu1 %v1123_v55 }
  0x69   :  { %516 = vmatpush2.bf16.msra.mxu0 %v1125_v56 }
  0x6a   :  { %559 = vmatpush2.bf16.msra.mxu1 %v1126_v57  ;;  %517 = vmatprep.subr.bf16.mxu0 %v1127_v58 }
  0x6b   :  { %560 = vmatprep.subr.bf16.mxu1 %v1129_v59 }
  0x6d   :  { %518 = vmatpush2.bf16.msra.mxu0 %v1131_v60 }
  0x6e   :  { %561 = vmatpush2.bf16.msra.mxu1 %v1132_v61  ;;  %519 = vmatprep.subr.bf16.mxu0 %v1133_v62  ;;  %v1165_v62 = vld [vmem:[#allocation8 + $0x18] sm:$0xff]  }
  0x6f   :  { %562 = vmatprep.subr.bf16.mxu1 %v1135_v63  ;;  %v1166_v63 = vld [vmem:[#allocation8 + $0x10] sm:$0xff]  }
  0x71   :  { %520 = vmatpush2.bf16.msra.mxu0 %v1137_v0  ;;  %v1167_v0 = vld [vmem:[#allocation8 + $0x8] sm:$0xff]  }
  0x72   :  { %563 = vmatpush2.bf16.msra.mxu1 %v1138_v1  ;;  %521 = vmatprep.subr.bf16.mxu0 %v1139_v2  ;;  %v1168_v1 = vld [vmem:[#allocation8] sm:$0xff]  }
  0x73   :  { %564 = vmatprep.subr.bf16.mxu1 %v1141_v3 }
  0x75   :  { %522 = vmatpush2.bf16.msra.mxu0 %v1143_v4 }
  0x76   :  { %565 = vmatpush2.bf16.msra.mxu1 %v1144_v5  ;;  %985 = vmatprep.subr.bf16.mxu0 %v1145_v10  ;;  %v959_v5 = vld [vmem:[%s1364_s4] ss:$0 sm:$0xff]  ;;  %s1249_s4 = scalar_lea.vmem %s882_s8, 256 }
  0x77   :  { %1016 = vmatprep.subr.bf16.mxu1 %v1287_v29  ;;  %p1250_p6 = scmp.ne.s32.totalorder %s882_s8, %s1249_s4  ;;  %p1255_p8 = scmp.lt.s32.totalorder %s1249_s4, %s1249_s4 }
  0x78   :  { %524 = vmatmul.mubr.bf16.vlgmr.msra.gmra.mxu0 %v91_v11 }
  0x79   :  { %567 = vmatmul.mubr.bf16.vlgmr.msra.gmra.mxu1 %v93_v12  ;;  %986 = vmatpush3.bf16.msra.mxu0 %v1146_v13  ;;  %p1256_p9 = por %p1255_p8, %p1254_p7 }
  0x7a   :  { %987 = vmatprep.subr.bf16.mxu0 %v1147_v14  ;;  %1017 = vmatpush3.bf16.msra.mxu1 %v1161_v28  ;;  %v976_v14 = vld [vmem:[%s1366_s6] ss:$0 sm:$0xff] }
  0x7b   :  { %1018 = vmatprep.subr.bf16.mxu1 %v1287_v29  ;;  %1032 = vmatprep.mubr.msk.bf16.mxu1 %vm1288_vm0, %v1287_v29  ;;  %p1257_p10 = pnand %p1256_p9, %p1250_p6 }
  0x7d   :  { %988 = vmatpush3.bf16.msra.mxu0 %v1148_v15 }
  0x7e   :  { %989 = vmatprep.subr.bf16.mxu0 %v1149_v16  ;;  %1019 = vmatpush3.bf16.msra.mxu1 %v1162_v30 }
  0x7f   :  { %1020 = vmatprep.subr.bf16.mxu1 %v1287_v29 }
  0x81   :  { %990 = vmatpush3.bf16.msra.mxu0 %v1150_v17 }
  0x82   :  { %991 = vmatprep.subr.bf16.mxu0 %v1151_v18  ;;  %1021 = vmatpush3.bf16.msra.mxu1 %v1163_v31 }
  0x83   :  { %1022 = vmatprep.subr.bf16.mxu1 %v1287_v29 }
  0x85   :  { %992 = vmatpush3.bf16.msra.mxu0 %v1152_v19 }
  0x86   :  { %993 = vmatprep.subr.bf16.mxu0 %v1153_v20  ;;  %1023 = vmatpush3.bf16.msra.mxu1 %v1164_v32 }
  0x87   :  { %1024 = vmatprep.subr.bf16.mxu1 %v1287_v29 }
  0x89   :  { %994 = vmatpush3.bf16.msra.mxu0 %v1154_v21 }
  0x8a   :  { %995 = vmatprep.subr.bf16.mxu0 %v1155_v22  ;;  %1025 = vmatpush3.bf16.msra.mxu1 %v1165_v62 }
  0x8b   :  { %1026 = vmatprep.subr.bf16.mxu1 %v1287_v29 }
  0x8d   :  { %996 = vmatpush3.bf16.msra.mxu0 %v1156_v23 }
  0x8e   :  { %997 = vmatprep.subr.bf16.mxu0 %v1157_v24  ;;  %1027 = vmatpush3.bf16.msra.mxu1 %v1166_v63 }
  0x8f   :  { %1028 = vmatprep.subr.bf16.mxu1 %v1287_v29 }
  0x91   :  { %998 = vmatpush3.bf16.msra.mxu0 %v1158_v25 }
  0x92   :  { %999 = vmatprep.subr.bf16.mxu0 %v1159_v26  ;;  %1029 = vmatpush3.bf16.msra.mxu1 %v1167_v0 }
  0x93   :  { %1030 = vmatprep.subr.bf16.mxu1 %v1287_v29 }
  0x95   :  { %1000 = vmatpush3.bf16.msra.mxu0 %v1160_v27 }
  0x96   :  { %1031 = vmatpush3.bf16.msra.mxu1 %v1168_v1 }
 0x138   :  { %v525_v40 = vpop.f32.mrf.mxu0 }
 0x139   :  { %v568_v41 = vpop.f32.mrf.mxu1  ;;  %v526_v45 = vadd.f32 %v525_v40, %v164_v39 }
 0x13a   :  { %v527_v42 = vpop.f32.mrf.mxu0 }
 0x13b   :  { %v570_v43 = vpop.f32.mrf.mxu1  ;;  %v528_v44 = vadd.f32 %v527_v42, %v168_v38  ;;  %v569_v53 = vadd.f32 %v568_v41, %v526_v45 }
 0x13c   :  { %v529_v46 = vpop.f32.mrf.mxu0 }
 0x13d   :  { %v572_v47 = vpop.f32.mrf.mxu1  ;;  %v530_v48 = vadd.f32 %v529_v46, %v164_v39  ;;  %v571_v50 = vadd.f32 %v570_v43, %v528_v44  ;;  %v577_v59 = vmax.f32 %v569_v53, 0.0 }
 0x13e   :  { %v531_v49 = vpop.f32.mrf.mxu0 }
 0x13f   :  { %v573_v51 = vadd.f32 %v572_v47, %v530_v48  ;;  %v532_v52 = vadd.f32 %v531_v49, %v168_v38  ;;  %v574_v54 = vpop.f32.mrf.mxu1  ;;  %v578_v57 = vmax.f32 %v571_v50, 0.0 }
 0x141   :  { %v575_v55 = vadd.f32 %v574_v54, %v532_v52  ;;  %v579_v56 = vmax.f32 %v573_v51, 0.0 }
 0x143   :  { %v580_v58 = vmax.f32 %v575_v55, 0.0  ;;  %v581_v61 = vpack.c.bf16 %v579_v56, %v577_v59 }
 0x145   :  { %v582_v60 = vpack.c.bf16 %v580_v58, %v578_v57 }
 0x147   :  { %750 = vmatprep.mubr.bf16.mxu0 %v582_v60 }
 0x148   :  { %751 = vmatmul.mubr.bf16.vlgmr.msra.gmra.mxu0 %v581_v61 }
 0x208   :  { %v1001_v2 = vpop.f32.mrf.mxu0 }
 0x20a   :  { %v1002_v3 = vpop.f32.mrf.mxu0 }
 0x20b   :  { %v1003_v4 = vadd.f32 %v1002_v3, %v1001_v2 }
 0x20c   :  { %v1004_v6 = vpop.f32.mrf.mxu0 }
 0x20d   :  { %v753_v8 = vadd.f32 %v1003_v4, %v959_v5 }
 0x20e   :  { %v1005_v7 = vpop.f32.mrf.mxu0 }
 0x20f   :  { %v1006_v9 = vadd.f32 %v1005_v7, %v1004_v6  ;;  %v759_v11 = vmax.f32 %v753_v8, 0.0 }
 0x211   :  { %v756_v10 = vadd.f32 %v1006_v9, %v959_v5 }
 0x213   :  { %v760_v12 = vmax.f32 %v756_v10, 0.0 }
 0x215   :  { %v761_v13 = vpack.c.bf16 %v760_v12, %v759_v11 }
 0x217   :  { %1033 = vmatmul.mubr.bf16.vlgmr.msra.gmra.mxu1 %v761_v13 }
 0x2d7   :  { %v867_v15 = vpop.f32.mrf.mxu1 }
 0x2d8   :  { %v868_v16 = vadd.f32 %v976_v14, %v867_v15 }
 0x2d9   :  { %v1034_v17 = vpop.f32.mrf.mxu1 }
 0x2da   :  { %874 = vst [vmem:[#allocation10] sm:$0xff] %v868_v16 }
 0x2db   :  { %v870_v18 = vpop.f32.mrf.mxu1 }
 0x2dc   :  { %v871_v19 = vadd.f32 %v976_v14, %v870_v18 }
 0x2dd   :  { %v1035_v20 = vpop.f32.mrf.mxu1 }
 0x2de   :  { %875 = vst [vmem:[#allocation10 + $0x8] sm:$0xff] %v871_v19 }
 0x2df   :  { %1260 = shalt.err (!%p1257_p10)
}
 0x2e0   :  { %887 = dma.vmem_to_hbm [thread:$0]  %s882_s8, 256, %s1367_s7, [#allocation4], %s1278_s27, %s1278_s27, %s1279_s28  }
 0x2e1   :  { %1275 = dma.done.wait [#allocation4], 256  }
 0x2e2   :  { %1276 = vsyncadd [#allocation4], 4294967040 }
 0x2e3   :  { %891 = vsyncpa [#allocation3], 1 }
 0x2e4   :  { %892 = vsyncpa [#allocation6], 1 }
 0x2e5   :  { %893 = vsyncpa [#allocation9], 1 }
 0x2e6   :  { %894 = vsyncpa [#allocation4], 1 }

</bundles_post_ra>
